<compile_context>
chip_gen: v7x
topology: tpu7x:2x2x1
jax: 0.10.0
libtpu: 0.0.40
codegen_flags: <defaults>
</compile_context>

<pallas_src>
import jax
import jax.numpy as jnp
from jax.experimental import pallas as pl
from jax.experimental.pallas import tpu as pltpu


_LANE = 512  # lane-dense tile width (multiple of 128)


def _cdiv(a, b):
    return -(-a // b)


def _round_up(a, b):
    return _cdiv(a, b) * b


def _vmem_capacity_bytes():
    try:
        return int(pltpu.get_tpu_info().vmem_capacity_bytes)
    except Exception:
        return 64 * 1024 * 1024  # conservative fallback = v7x per-TC VMEM


def _detect_num_cores():
    # TODO(synk): no stable public API for TensorCores-per-chip; best-effort
    # heuristic (v7x has 2 TCs/chip, v5e/v6e have 1).  Safe default is 1.
    try:
        kind = jax.devices()[0].device_kind.lower()
        if "v7" in kind:
            return 2
    except Exception:
        pass
    return 1


def _make_kernel(num_models, tile_rows, tiles_per_core, valid_rows, needs_mask, scale):
    inv_m = 1.0 / num_models

    def kernel(*args):
        x_refs = args[:num_models]
        o_ref = args[num_models]          # (8, 128) f32 VMEM block: this core's partial
        acc_ref = args[num_models + 1]    # (8, _LANE) f32 VMEM scratch

        c = pl.program_id(0)              # parallel (core) axis
        i = pl.program_id(1)              # reduction (row-tile) axis

        @pl.when(i == 0)
        def _():
            acc_ref[...] = jnp.zeros_like(acc_ref)

        # Shifted identity: sum_m (x_m - mean)^2 = sum_m d_m^2 - (sum_m d_m)^2 / M,
        # with d_m = x_m - x_0 (the m=0 term vanishes).  Zero-padded elements
        # contribute exactly 0, so host zero-padding needs no masking.
        x0 = x_refs[0][...].astype(jnp.float32)
        if num_models == 1:
            contrib = jnp.zeros_like(x0)
        else:
            d = x_refs[1][...].astype(jnp.float32) - x0
            s = d
            sq = d * d
            for m in range(2, num_models):
                d = x_refs[m][...].astype(jnp.float32) - x0
                s = s + d
                sq = sq + d * d
            contrib = sq - (s * s) * inv_m

        if needs_mask:
            # Ragged final tile / over-provisioned core: drop logical rows >= valid_rows
            # (Pallas partial blocks read undefined data past the array end).
            row_ids = jax.lax.broadcasted_iota(jnp.int32, contrib.shape, 0)
            global_rows = (c * tiles_per_core + i) * tile_rows + row_ids
            contrib = jnp.where(global_rows < valid_rows, contrib, 0.0)

        # Fold sublane groups into the small (8, _LANE) accumulator: same VALU
        # adds, far fewer accumulator VMEM ld/st, only 16 KiB of scratch.
        acc_ref[...] += contrib.reshape(tile_rows // 8, 8, contrib.shape[-1]).sum(axis=0)

        @pl.when(i == pl.num_programs(1) - 1)
        def _():
            # Final scale lambda/(M*B*numel) folded into the kernel write.
            total = jnp.sum(acc_ref[...]) * scale
            o_ref[...] = jnp.broadcast_to(total, o_ref.shape)

    return kernel


def diversity_loss(outputs, lambda_div=0.1, num_cores=None):
    """outputs: list of M arrays, each of shape (B, ...). Returns scalar f32 loss."""
    num_models = len(outputs)
    assert num_models >= 1
    batch_size = int(outputs[0].shape[0])
    numel = 1
    for d in outputs[0].shape:
        numel *= int(d)

    vmem_cap = _vmem_capacity_bytes()
    if num_cores is None:
        num_cores = _detect_num_cores()

    # --- lane-dense 2-D view (pad only when numel isn't a multiple of _LANE) ---
    if numel % _LANE == 0:
        arr_rows = numel // _LANE
        pad_to = numel                      # no host-side pad copy
    else:
        arr_rows = _round_up(_cdiv(numel, _LANE), 8)
        pad_to = arr_rows * _LANE           # minimal zero-pad, needed for the reshape

    xs = []
    for out in outputs:
        flat = jnp.ravel(out)
        if pad_to != numel:
            flat = jnp.pad(flat, (0, pad_to - numel))
        xs.append(flat.reshape(arr_rows, _LANE))

    itemsize = jnp.dtype(xs[0].dtype).itemsize

    # --- tile sizing: biggest tile that fits the per-generation VMEM budget ---
    budget = max(min(vmem_cap - (16 << 20), 56 << 20), 8 << 20)
    tile_rows = 1024 if vmem_cap >= (100 << 20) else 512   # v5e/v6e vs v7x
    while tile_rows > 8 and num_models * 2 * tile_rows * _LANE * itemsize + (64 << 10) > budget:
        tile_rows //= 2
    # Small inputs: a single tile per core (no tiny 8-row multi-step launches).
    tile_rows = min(tile_rows, _round_up(arr_rows, 8))

    tiles_total = _cdiv(arr_rows, tile_rows)
    num_cores = max(1, min(num_cores, tiles_total))
    tiles_per_core = _cdiv(tiles_total, num_cores)
    covered_rows = num_cores * tiles_per_core * tile_rows
    needs_mask = covered_rows > arr_rows
    needs_clamp = num_cores * tiles_per_core > tiles_total
    max_block = tiles_total - 1

    if needs_clamp:
        def in_index_map(c, i):
            return (jnp.minimum(c * tiles_per_core + i, max_block), 0)
    else:
        def in_index_map(c, i):
            return (c * tiles_per_core + i, 0)

    in_specs = [pl.BlockSpec((tile_rows, _LANE), in_index_map)
                for _ in range(num_models)]
    out_specs = pl.BlockSpec((8, 128), lambda c, i: (c, 0))

    tile_in_bytes = tile_rows * _LANE * itemsize
    vmem_need = num_models * 2 * tile_in_bytes + (8 * _LANE + 8 * 128) * 4
    vmem_limit = int(min(max(vmem_need + (4 << 20), 16 << 20), vmem_cap - (8 << 20)))

    scale = float(lambda_div) / float(num_models * batch_size * numel)

    total_in_bytes = sum(int(x.size) * itemsize for x in xs)
    cost = pl.CostEstimate(
        flops=int((3 * max(num_models - 1, 1) + 4) * covered_rows * _LANE),
        transcendentals=0,
        bytes_accessed=int(total_in_bytes + num_cores * 8 * 128 * 4),
    )

    out = pl.pallas_call(
        _make_kernel(num_models, tile_rows, tiles_per_core, arr_rows, needs_mask, scale),
        out_shape=jax.ShapeDtypeStruct((num_cores * 8, 128), jnp.float32),
        grid_spec=pltpu.PrefetchScalarGridSpec(
            num_scalar_prefetch=0,
            grid=(num_cores, tiles_per_core),
            in_specs=in_specs,
            out_specs=out_specs,
            scratch_shapes=[pltpu.VMEM((8, _LANE), jnp.float32)],
        ),
        compiler_params=pltpu.CompilerParams(
            dimension_semantics=("parallel", "arbitrary"),
            vmem_limit_bytes=vmem_limit,
        ),
        cost_estimate=cost,
    )(*xs)

    # Each core's (8,128) block holds its already-scaled partial sum (broadcast);
    # summing the per-core scalars gives the loss.
    return jnp.sum(out.reshape(num_cores, 8, 128)[:, 0, 0])


def _reference(outputs, lambda_div=0.1):
    x = jnp.stack([o.astype(jnp.float32) for o in outputs], axis=0)
    mean = jnp.mean(x, axis=0)
    loss = 0.0
    for m in range(x.shape[0]):
        loss += jnp.mean((x[m] - mean) ** 2)
    return lambda_div * loss / (x.shape[0] * outputs[0].shape[0])


if __name__ == "__main__":
    key = jax.random.PRNGKey(0)

    # Case 1: classification-logit shaped outputs (B=2, C=32) — exercises the
    # minimal zero-pad path (numel not a multiple of 512).
    num_models, batch, num_classes = 3, 2, 32
    keys = jax.random.split(key, num_models)
    outputs = [jax.random.normal(k, (batch, num_classes), dtype=jnp.float32)
               for k in keys]
    loss = jax.block_until_ready(diversity_loss(outputs, lambda_div=0.1))
    ref = jax.block_until_ready(_reference(outputs, lambda_div=0.1))
    assert jnp.allclose(loss, ref, rtol=1e-5, atol=1e-6), (loss, ref)

    # Case 2: 512-aligned numel with a ragged row count — exercises the
    # no-host-pad path with in-kernel masking of the partial final tile.
    keys2 = jax.random.split(jax.random.PRNGKey(0), 4)
    outputs2 = [jax.random.normal(k, (4, 640), dtype=jnp.float32) for k in keys2]
    loss2 = jax.block_until_ready(diversity_loss(outputs2, lambda_div=0.05))
    ref2 = jax.block_until_ready(_reference(outputs2, lambda_div=0.05))
    assert jnp.allclose(loss2, ref2, rtol=1e-5, atol=1e-6), (loss2, ref2)

    print("KERNEL_OK")
</pallas_src>

<mosaic_0001>
module attributes {stable_mosaic.version = 11 : i64} {
  func.func @kernel(%arg0: i32, %arg1: i32, %arg2: memref<8x512xf32, #tpu.memory_space<vmem>>, %arg3: memref<8x512xf32, #tpu.memory_space<vmem>>, %arg4: memref<8x512xf32, #tpu.memory_space<vmem>>, %arg5: memref<8x128xf32, #tpu.memory_space<vmem>>, %arg6: memref<8x512xf32, #tpu.memory_space<vmem>>) attributes {dimension_semantics = [#tpu.dimension_semantics<parallel>, #tpu.dimension_semantics<arbitrary>], iteration_bounds = array<i64: 1, 1>, scalar_prefetch = 0 : i64, scratch_operands = 1 : i64, tpu.core_type = #tpu.core_type<tc>, window_params = [{transform_indices = @transform_0, window_bounds = array<i64: 8, 512>}, {transform_indices = @transform_1, window_bounds = array<i64: 8, 512>}, {transform_indices = @transform_2, window_bounds = array<i64: 8, 512>}, {transform_indices = @transform_3, window_bounds = array<i64: 8, 128>}]} {
    %c0_i32 = arith.constant 0 : i32
    %0 = arith.cmpi eq, %arg1, %c0_i32 : i32
    %1 = arith.extui %0 : i1 to i32
    %c0_i32_0 = arith.constant 0 : i32
    %2 = arith.cmpi ne, %1, %c0_i32_0 : i32
    scf.if %2 {
      %cst_13 = arith.constant 0.000000e+00 : f32
      %24 = vector.broadcast %cst_13 : f32 to vector<8x512xf32>
      %c0_14 = arith.constant 0 : index
      %c0_15 = arith.constant 0 : index
      %25 = vector.load %arg6[%c0_14, %c0_15] : memref<8x512xf32, #tpu.memory_space<vmem>>, vector<8x512xf32>
      tpu.vector_store %arg6[%c0_14, %c0_15], %24 {strides = array<i32>} : memref<8x512xf32, #tpu.memory_space<vmem>>, vector<8x512xf32>,
    } else {
    }
    %c0 = arith.constant 0 : index
    %c0_1 = arith.constant 0 : index
    %3 = vector.load %arg2[%c0, %c0_1] : memref<8x512xf32, #tpu.memory_space<vmem>>, vector<8x512xf32>
    %c0_2 = arith.constant 0 : index
    %c0_3 = arith.constant 0 : index
    %4 = vector.load %arg3[%c0_2, %c0_3] : memref<8x512xf32, #tpu.memory_space<vmem>>, vector<8x512xf32>
    %5 = arith.subf %4, %3 : vector<8x512xf32>
    %6 = arith.mulf %5, %5 : vector<8x512xf32>
    %c0_4 = arith.constant 0 : index
    %c0_5 = arith.constant 0 : index
    %7 = vector.load %arg4[%c0_4, %c0_5] : memref<8x512xf32, #tpu.memory_space<vmem>>, vector<8x512xf32>
    %8 = arith.subf %7, %3 : vector<8x512xf32>
    %9 = arith.addf %5, %8 : vector<8x512xf32>
    %10 = arith.mulf %8, %8 : vector<8x512xf32>
    %11 = arith.addf %6, %10 : vector<8x512xf32>
    %12 = arith.mulf %9, %9 : vector<8x512xf32>
    %cst = arith.constant 0.333333343 : f32
    %13 = vector.broadcast %cst : f32 to vector<8x512xf32>
    %14 = arith.mulf %12, %13 : vector<8x512xf32>
    %15 = arith.subf %11, %14 : vector<8x512xf32>
    %c0_6 = arith.constant 0 : index
    %c0_7 = arith.constant 0 : index
    %16 = vector.load %arg6[%c0_6, %c0_7] : memref<8x512xf32, #tpu.memory_space<vmem>>, vector<8x512xf32>
    %17 = vector.shape_cast %15 : vector<8x512xf32> to vector<1x8x512xf32>
    %cst_8 = arith.constant dense<0.000000e+00> : vector<8x512xf32>
    %18 = vector.multi_reduction <add>, %17, %cst_8 [0] : vector<1x8x512xf32> to vector<8x512xf32>
    %19 = arith.addf %16, %18 : vector<8x512xf32>
    %c0_9 = arith.constant 0 : index
    %c0_10 = arith.constant 0 : index
    %20 = vector.load %arg6[%c0_9, %c0_10] : memref<8x512xf32, #tpu.memory_space<vmem>>, vector<8x512xf32>
    tpu.vector_store %arg6[%c0_9, %c0_10], %19 {strides = array<i32>} : memref<8x512xf32, #tpu.memory_space<vmem>>, vector<8x512xf32>,
    %c0_i32_11 = arith.constant 0 : i32
    %21 = arith.cmpi eq, %arg1, %c0_i32_11 : i32
    %22 = arith.extui %21 : i1 to i32
    %c0_i32_12 = arith.constant 0 : i32
    %23 = arith.cmpi ne, %22, %c0_i32_12 : i32
    scf.if %23 {
      %c0_13 = arith.constant 0 : index
      %c0_14 = arith.constant 0 : index
      %24 = vector.load %arg6[%c0_13, %c0_14] : memref<8x512xf32, #tpu.memory_space<vmem>>, vector<8x512xf32>
      %25 = vector.shape_cast %24 : vector<8x512xf32> to vector<1x8x512xf32>
      %cst_15 = arith.constant dense<0.000000e+00> : vector<1xf32>
      %26 = vector.multi_reduction <add>, %25, %cst_15 [1, 2] : vector<1x8x512xf32> to vector<1xf32>
      %27 = vector.shape_cast %26 : vector<1xf32> to vector<1x1x1xf32>
      %28 = vector.extract %27[0, 0, 0] : f32 from vector<1x1x1xf32>
      %cst_16 = arith.constant 2.6041668E-4 : f32
      %29 = arith.mulf %28, %cst_16 : f32
      %30 = vector.broadcast %29 : f32 to vector<8x128xf32>
      %c0_17 = arith.constant 0 : index
      %c0_18 = arith.constant 0 : index
      %31 = vector.load %arg5[%c0_17, %c0_18] : memref<8x128xf32, #tpu.memory_space<vmem>>, vector<8x128xf32>
      tpu.vector_store %arg5[%c0_17, %c0_18], %30 {strides = array<i32>} : memref<8x128xf32, #tpu.memory_space<vmem>>, vector<8x128xf32>,
    } else {
    }
    return
  }
  func.func @transform_0(%arg0: i32, %arg1: i32) -> (i32, i32) {
    %c1_i32 = arith.constant 1 : i32
    %0 = arith.muli %arg0, %c1_i32 : i32
    %1 = arith.addi %0, %arg1 : i32
    %c0_i32 = arith.constant 0 : i32
    %c0_i32_0 = arith.constant 0 : i32
    return %1, %c0_i32 : i32, i32
  }
  func.func @transform_1(%arg0: i32, %arg1: i32) -> (i32, i32) {
    %c1_i32 = arith.constant 1 : i32
    %0 = arith.muli %arg0, %c1_i32 : i32
    %1 = arith.addi %0, %arg1 : i32
    %c0_i32 = arith.constant 0 : i32
    %c0_i32_0 = arith.constant 0 : i32
    return %1, %c0_i32 : i32, i32
  }
  func.func @transform_2(%arg0: i32, %arg1: i32) -> (i32, i32) {
    %c1_i32 = arith.constant 1 : i32
    %0 = arith.muli %arg0, %c1_i32 : i32
    %1 = arith.addi %0, %arg1 : i32
    %c0_i32 = arith.constant 0 : i32
    %c0_i32_0 = arith.constant 0 : i32
    return %1, %c0_i32 : i32, i32
  }
  func.func @transform_3(%arg0: i32, %arg1: i32) -> (i32, i32) {
    %c0_i32 = arith.constant 0 : i32
    %c0_i32_0 = arith.constant 0 : i32
    return %arg0, %c0_i32 : i32, i32
  }
}

</mosaic_0001>

<bundles_post_ra>
// kernel: tpu_custom_call.1
= control target key start
LH: loop header
LB: loop body
LE: loop exit
PB: predicated region body
PF: predicated region fallthrough
CT: control target
= control target key end

     0   :  { %8 = vsyncpa [#allocation4], 0  ;;  %s347_s0 = inlined_call_operand.hbm [shape: f32[8,512], index: 0, kind: input, shape index: {}]   ;;  %s348_s1 = inlined_call_operand.hbm [shape: f32[8,512], index: 1, kind: input, shape index: {}]   ;;  %s349_s2 = inlined_call_operand.hbm [shape: f32[8,512], index: 2, kind: input, shape index: {}]   ;;  %s350_s3 = inlined_call_operand.hbm [shape: f32[8,128], index: 3, kind: output, shape index: {}]  }
   0x1   :  { %9 = vsyncpa [#allocation7], 0 }
   0x2   :  { %10 = vsyncpa [#allocation5], 0  ;;  %s275_s12 = smov [#allocation6]   ;;  %s276_s14 = smov [#allocation3]  }
   0x3   :  { %s35_s13 = sshll.u32 %s275_s12, 4  ;;  %s21_s15 = sshll.u32 %s276_s14, 4  ;;  %s36_s13 = int_to_ptr.vmem [resolvable:$true] %s35_s13  ;;  %s22_s15 = int_to_ptr.vmem [resolvable:$true] %s21_s15 }
   0x4   :  { %s181_s18 = scalar_lea.hbm %s348_s1, 512 }
   0x5   :  { %p182_p0 = scmp.ne.s32.totalorder %s348_s1, %s181_s18  ;;  %p185_p1 = scmp.lt.u32.totalorder %s181_s18, %s348_s1 }
   0x7   :  { %p187_p2 = pnand %p185_p1, %p182_p0 }
   0x9   :  { %190 = shalt.err (!%p187_p2)
}
   0xa   :  { %s191_s23 = scalar_lea.vmem %s36_s13, 512  ;;  %p196_p4 = scmp.lt.s32.totalorder %s36_s13, %s36_s13 }
   0xb   :  { %p192_p3 = scmp.ne.s32.totalorder %s36_s13, %s191_s23  ;;  %p197_p5 = scmp.lt.s32.totalorder %s191_s23, %s191_s23 }
   0xd   :  { %p198_p6 = por %p197_p5, %p196_p4 }
   0xf   :  { %p199_p7 = pnand %p198_p6, %p192_p3 }
  0x11   :  { %202 = shalt.err (!%p199_p7)
}
  0x12   :  { %38 = dma.hbm_to_vmem [thread:$0]  %s348_s1, 512, %s36_s13, [#allocation7]  }
  0x13   :  { %s203_s28 = scalar_lea.hbm %s347_s0, 512 }
  0x14   :  { %p204_p8 = scmp.ne.s32.totalorder %s347_s0, %s203_s28  ;;  %p207_p9 = scmp.lt.u32.totalorder %s203_s28, %s347_s0 }
  0x16   :  { %p209_p10 = pnand %p207_p9, %p204_p8 }
  0x18   :  { %212 = shalt.err (!%p209_p10)
}
  0x19   :  { %s213_s6 = scalar_lea.vmem %s22_s15, 512  ;;  %p218_p12 = scmp.lt.s32.totalorder %s22_s15, %s22_s15 }
  0x1a   :  { %p214_p11 = scmp.ne.s32.totalorder %s22_s15, %s213_s6  ;;  %p219_p13 = scmp.lt.s32.totalorder %s213_s6, %s213_s6 }
  0x1c   :  { %p220_p0 = por %p219_p13, %p218_p12 }
  0x1e   :  { %p221_p1 = pnand %p220_p0, %p214_p11 }
  0x20   :  { %224 = shalt.err (!%p221_p1)
}
  0x21   :  { %24 = dma.hbm_to_vmem [thread:$0]  %s347_s0, 512, %s22_s15, [#allocation4]  }
  0x22   :  { %s277_s8 = smov [#allocation8]   ;;  %s225_s12 = scalar_lea.hbm %s349_s2, 512 }
  0x23   :  { %s49_s9 = sshll.u32 %s277_s8, 4  ;;  %p226_p2 = scmp.ne.s32.totalorder %s349_s2, %s225_s12  ;;  %s50_s9 = int_to_ptr.vmem [resolvable:$true] %s49_s9 }
  0x24   :  { %p229_p3 = scmp.lt.u32.totalorder %s225_s12, %s349_s2 }
  0x26   :  { %p231_p4 = pnand %p229_p3, %p226_p2 }
  0x28   :  { %234 = shalt.err (!%p231_p4)
}
  0x29   :  { %s235_s18 = scalar_lea.vmem %s50_s9, 512  ;;  %p240_p6 = scmp.lt.s32.totalorder %s50_s9, %s50_s9 }
  0x2a   :  { %p236_p5 = scmp.ne.s32.totalorder %s50_s9, %s235_s18  ;;  %p241_p7 = scmp.lt.s32.totalorder %s235_s18, %s235_s18 }
  0x2c   :  { %p242_p8 = por %p241_p7, %p240_p6 }
  0x2e   :  { %p243_p9 = pnand %p242_p8, %p236_p5 }
  0x30   :  { %246 = shalt.err (!%p243_p9)
}
  0x31   :  { %52 = dma.hbm_to_vmem [thread:$0]  %s349_s2, 512, %s50_s9, [#allocation7]  }
  0x32   :  { %269 = dma.done.wait [#allocation4], 512  }
  0x33   :  { %270 = vsyncadd [#allocation4], 4294966784 }
  0x34   :  { %271 = dma.done.wait [#allocation7], 1024  }
  0x35   :  { %272 = vsyncadd [#allocation7], 4294966272  ;;  %v73_v0 = vld [vmem:[#allocation3] sm:$0xff]  ;;  %v74_v1 = vld [vmem:[#allocation3 + $0x8] sm:$0xff]  ;;  %s278_s2 = smov [#allocation9]  }
  0x36   :  { %v75_v2 = vld [vmem:[#allocation3 + $0x10] sm:$0xff]  ;;  %v76_v3 = vld [vmem:[#allocation3 + $0x18] sm:$0xff]  ;;  %v77_v4 = vld [vmem:[#allocation6] sm:$0xff]  ;;  %s165_s19 = sshll.u32 %s278_s2, 4  ;;  %s166_s19 = int_to_ptr.vmem [resolvable:$true] %s165_s19 }
  0x37   :  { %v78_v5 = vld [vmem:[#allocation6 + $0x8] sm:$0xff]  ;;  %v79_v6 = vld [vmem:[#allocation6 + $0x10] sm:$0xff]  ;;  %v80_v7 = vld [vmem:[#allocation6 + $0x18] sm:$0xff]  ;;  %v81_v8 = vsub.f32 %v77_v4, %v73_v0  ;;  %s247_s22 = scalar_lea.vmem %s166_s19, 128  ;;  %p252_p11 = scmp.lt.s32.totalorder %s166_s19, %s166_s19 }
  0x38   :  { %v82_v9 = vsub.f32 %v78_v5, %v74_v1  ;;  %v89_v10 = vld [vmem:[#allocation8] sm:$0xff]  ;;  %v83_v11 = vsub.f32 %v79_v6, %v75_v2  ;;  %v84_v12 = vsub.f32 %v80_v7, %v76_v3  ;;  %v90_v13 = vld [vmem:[#allocation8 + $0x8] sm:$0xff]  ;;  %v91_v14 = vld [vmem:[#allocation8 + $0x10] sm:$0xff]  ;;  %p248_p10 = scmp.ne.s32.totalorder %s166_s19, %s247_s22  ;;  %p253_p12 = scmp.lt.s32.totalorder %s247_s22, %s247_s22 }
  0x39   :  { %v92_v15 = vld [vmem:[#allocation8 + $0x18] sm:$0xff]  ;;  %v93_v16 = vsub.f32 %v89_v10, %v73_v0  ;;  %v85_v17 = vmul.f32 %v81_v8, %v81_v8  ;;  %v94_v19 = vsub.f32 %v90_v13, %v74_v1  ;;  %v95_v20 = vsub.f32 %v91_v14, %v75_v2 }
  0x3a   :  { %v86_v18 = vmul.f32 %v82_v9, %v82_v9  ;;  %v87_v21 = vmul.f32 %v83_v11, %v83_v11  ;;  %v88_v22 = vmul.f32 %v84_v12, %v84_v12  ;;  %v96_v23 = vsub.f32 %v92_v15, %v76_v3  ;;  %p254_p13 = por %p253_p12, %p252_p11 }
  0x3b   :  { %v97_v24 = vadd.f32 %v93_v16, %v81_v8  ;;  %v98_v25 = vadd.f32 %v94_v19, %v82_v9  ;;  %v99_v26 = vadd.f32 %v95_v20, %v83_v11  ;;  %v101_v27 = vmul.f32 %v93_v16, %v93_v16 }
  0x3c   :  { %v102_v28 = vmul.f32 %v94_v19, %v94_v19  ;;  %v100_v29 = vadd.f32 %v96_v23, %v84_v12  ;;  %v103_v30 = vmul.f32 %v95_v20, %v95_v20  ;;  %v104_v31 = vmul.f32 %v96_v23, %v96_v23  ;;  %p255_p0 = pnand %p254_p13, %p248_p10 }
  0x3d   :  { %v109_v32 = vmul.f32 %v97_v24, %v97_v24  ;;  %v105_v33 = vadd.f32 %v101_v27, %v85_v17  ;;  %v110_v35 = vmul.f32 %v98_v25, %v98_v25  ;;  %v111_v36 = vmul.f32 %v99_v26, %v99_v26 }
  0x3e   :  { %v106_v34 = vadd.f32 %v102_v28, %v86_v18  ;;  %v107_v37 = vadd.f32 %v103_v30, %v87_v21  ;;  %v112_v38 = vmul.f32 %v100_v29, %v100_v29  ;;  %v108_v40 = vadd.f32 %v104_v31, %v88_v22 }
  0x3f   :  { %v113_v39 = vmul.f32 0.33333334, %v109_v32  ;;  %v114_v41 = vmul.f32 0.33333334, %v110_v35  ;;  %v115_v42 = vmul.f32 0.33333334, %v111_v36 }
  0x40   :  { %v116_v43 = vmul.f32 0.33333334, %v112_v38 }
  0x41   :  { %v117_v44 = vsub.f32 %v105_v33, %v113_v39  ;;  %v118_v45 = vsub.f32 %v106_v34, %v114_v41  ;;  %v119_v46 = vsub.f32 %v107_v37, %v115_v42 }
  0x42   :  { %v120_v47 = vsub.f32 %v108_v40, %v116_v43 }
  0x43   :  { %v144_v48 = vadd.f32 %v118_v45, %v117_v44 }
  0x45   :  { %v145_v49 = vadd.f32 %v144_v48, %v119_v46 }
  0x47   :  { %v146_v50 = vadd.f32 %v145_v49, %v120_v47 }
  0x49   :  { %147 = vadd.xlane.f32.xlu0 %v146_v50 }
  0xd6   :  { %v148_v51 = vpop.xlane.xlu0 %147 }
  0xd7   :  { %v149_v52 = vrot.slane %v148_v51, 4 }
  0xd9   :  { %v150_v53 = vadd.f32 %v149_v52, %v148_v51 }
  0xdb   :  { %v151_v54 = vrot.slane %v150_v53, 2 }
  0xdd   :  { %v152_v55 = vadd.f32 %v151_v54, %v150_v53 }
  0xdf   :  { %v153_v56 = vrot.slane %v152_v55, 1 }
  0xe1   :  { %v154_v57 = vadd.f32 %v153_v56, %v152_v55 }
  0xe3   :  { %175 = vpush %v154_v57 }
 0x114   :  { %s176_s20 = spop %175 }
 0x115   :  { %s156_s21 = smul.f32 0.00026041668, %s176_s20 }
 0x117   :  { %v157_v58 = vstv %s156_s21 }
 0x118   :  { %158 = vst [vmem:[#allocation9] sm:$0xff] %v157_v58 }
 0x119   :  { %258 = shalt.err (!%p255_p0)
}
 0x11a   :  { %s259_s25 = scalar_lea.hbm %s350_s3, 128 }
 0x11b   :  { %p260_p1 = scmp.ne.s32.totalorder %s350_s3, %s259_s25  ;;  %p263_p2 = scmp.lt.u32.totalorder %s259_s25, %s350_s3 }
 0x11d   :  { %p265_p3 = pnand %p263_p2, %p260_p1 }
 0x11f   :  { %268 = shalt.err (!%p265_p3)
}
 0x120   :  { %168 = dma.vmem_to_hbm [thread:$0]  %s166_s19, 128, %s350_s3, [#allocation5]  }
 0x121   :  { %273 = dma.done.wait [#allocation5], 128  }
 0x122   :  { %274 = vsyncadd [#allocation5], 4294967168 }
 0x123   :  { %172 = vsyncpa [#allocation4], 1 }
 0x124   :  { %173 = vsyncpa [#allocation7], 1 }
 0x125   :  { %174 = vsyncpa [#allocation5], 1 }

</bundles_post_ra>
